<compile_context>
chip_gen: v7x
topology: tpu7x:2x2x1
jax: 0.10.0
libtpu: 0.0.40
codegen_flags: <defaults>
</compile_context>

<pallas_src>
import jax
import jax.numpy as jnp
from jax.experimental import pallas as pl
from jax.experimental.pallas import tpu as pltpu


def _round_up(x, m):
    return ((x + m - 1) // m) * m


def _policy_kernel(x_ref, w1_ref, b1_ref, w2_ref, b2_ref, w3_ref, b3_ref,
                   out_ref):
    # One batch tile per grid step.  bf16 MXU inputs, f32 accumulation,
    # f32 elementwise epilogue (safe on v5e: no bf16 VPU/EUP path).
    x = x_ref[...].astype(jnp.bfloat16)

    h1 = jnp.dot(x, w1_ref[...], preferred_element_type=jnp.float32)
    h1 = jnp.maximum(h1 + b1_ref[...], 0.0).astype(jnp.bfloat16)      # ReLU

    h2 = jnp.dot(h1, w2_ref[...], preferred_element_type=jnp.float32)
    h2 = jnp.maximum(h2 + b2_ref[...], 0.0).astype(jnp.bfloat16)      # ReLU

    y = jnp.dot(h2, w3_ref[...], preferred_element_type=jnp.float32)
    out_ref[...] = jnp.tanh(y + b3_ref[...]).astype(out_ref.dtype)    # tanh


def prepare_params(params):
    """One-time parameter preparation (bf16 weights, f32 biases, lane-padded
    final layer).  Call at init / after each optimizer update — NOT per
    forward — so the forward pass does no weight re-cast/re-pad HBM traffic.
    """
    w1 = params["w1"].astype(jnp.bfloat16)
    w2 = params["w2"].astype(jnp.bfloat16)
    w3 = params["w3"].astype(jnp.bfloat16)
    b1 = params["b1"].reshape(1, -1).astype(jnp.float32)
    b2 = params["b2"].reshape(1, -1).astype(jnp.float32)
    b3 = params["b3"].reshape(1, -1).astype(jnp.float32)

    action_dim = w3.shape[1]
    # Lane-dense output: pad final-layer columns to a multiple of 128
    # (zeros; tanh(0) = 0, sliced off by the wrapper).  Never go below 128 —
    # masked stores are a measured 4.5x regression.
    act_pad = _round_up(max(action_dim, 128), 128)
    if act_pad != action_dim:
        w3 = jnp.pad(w3, ((0, 0), (0, act_pad - action_dim)))
        b3 = jnp.pad(b3, ((0, 0), (0, act_pad - action_dim)))

    return dict(w1=w1, b1=b1, w2=w2, b2=b2, w3=w3, b3=b3,
                action_dim=action_dim, act_pad=act_pad)


def _vmem_budget_bytes(tb, state_dim, h1, h2, act_pad):
    """Rough VMEM footprint: double-buffered x/out tiles, single-buffered
    weights/biases, f32 activation temporaries.  Used to set an explicit
    vmem_limit_bytes (portable across v5e/v6e/v7x scoped defaults)."""
    lane = lambda n: _round_up(n, 128)
    x_tile = 2 * _round_up(tb, 8) * lane(state_dim) * 4            # f32, 2 bufs
    out_tile = 2 * _round_up(tb, 16) * lane(act_pad) * 2           # bf16, 2 bufs
    weights = (_round_up(state_dim, 16) * lane(h1)
               + _round_up(h1, 16) * lane(h2)
               + _round_up(h2, 16) * lane(act_pad)) * 2            # bf16, 1 buf
    biases = 8 * (lane(h1) + lane(h2) + lane(act_pad)) * 4         # f32
    acts = 2 * _round_up(tb, 8) * (lane(h1) + lane(h2)) * 4        # h1/h2 temps
    return x_tile + out_tile + weights + biases + acts


def _tiled(shape):
    # Batch-tiled operand: pipelined over the grid (double-buffered DMA).
    return pl.BlockSpec(shape, lambda i: (i, 0))


def _resident(shape):
    # Grid-invariant operand: constant index_map keeps it resident in VMEM;
    # single-buffered — no point keeping two copies of an invariant weight.
    return pl.BlockSpec(shape, lambda i: (0, 0), pipeline_mode=pl.Buffered(1))


def deterministic_policy_forward(states, prepared, *, tile_b=1024,
                                 out_dtype=jnp.float32):
    """states: [B, state_dim]; prepared: output of prepare_params()."""
    w1, b1 = prepared["w1"], prepared["b1"]
    w2, b2 = prepared["w2"], prepared["b2"]
    w3, b3 = prepared["w3"], prepared["b3"]
    action_dim = prepared["action_dim"]
    act_pad = prepared["act_pad"]

    B, D = states.shape

    # Shape-aware batch tile: multiple of 8 sublanes, sized so padded-row
    # waste stays small (tb ~= B / ceil(B / tile_b)), and >= 2 grid steps for
    # large B so the "parallel" axis can shard across both v7x TensorCores.
    tile_b = max(8, _round_up(int(tile_b), 8))
    n_tiles = pl.cdiv(B, tile_b)
    if n_tiles == 1 and B >= 512:
        n_tiles = 2
    tb = _round_up(pl.cdiv(B, n_tiles), 8)
    b_pad = tb * n_tiles

    # Guarded prep of states: no-op for the common case (f32, B a multiple
    # of the tile) — avoids an extra HBM read+write pass before the kernel.
    if states.dtype != jnp.float32:
        states = states.astype(jnp.float32)
    if b_pad != B:
        states = jnp.pad(states, ((0, b_pad - B), (0, 0)))

    budget = _vmem_budget_bytes(tb, D, w1.shape[1], w2.shape[1], act_pad)
    # 2x headroom + 8 MiB slack; cap at 64 MiB so the config stays valid on
    # v7x (64 MiB physical per TensorCore).
    vmem_limit = int(min(64 * 1024 * 1024, 2 * budget + 8 * 1024 * 1024))

    out_p = pl.pallas_call(
        _policy_kernel,
        out_shape=jax.ShapeDtypeStruct((b_pad, act_pad), jnp.bfloat16),
        grid=(n_tiles,),
        in_specs=[
            _tiled((tb, D)),            # states tile (pipelined over batch)
            _resident(w1.shape),        # weights / biases stay in VMEM
            _resident(b1.shape),
            _resident(w2.shape),
            _resident(b2.shape),
            _resident(w3.shape),
            _resident(b3.shape),
        ],
        out_specs=_tiled((tb, act_pad)),
        compiler_params=pltpu.CompilerParams(
            dimension_semantics=("parallel",),
            vmem_limit_bytes=vmem_limit),
    )(states, w1, b1, w2, b2, w3, b3)

    out = out_p
    if b_pad != B or act_pad != action_dim:
        out = out[:B, :action_dim]      # cheap: only the real rows/cols
    if out.dtype != out_dtype:
        out = out.astype(out_dtype)
    return out


def init_params(key, state_dim, action_dim, hidden_units=(256, 256)):
    """Deterministic synthetic init (stand-in for `initialize_weight`)."""
    # TODO(synk): the repo's `initialize_weight` scheme (orthogonal init) is
    # not replicated; it only affects parameter values, not forward math.
    dims = (state_dim,) + tuple(hidden_units) + (action_dim,)
    params = {}
    keys = jax.random.split(key, len(dims) - 1)
    for i, (din, dout) in enumerate(zip(dims[:-1], dims[1:]), start=1):
        scale = 1.0 / jnp.sqrt(jnp.float32(din))
        params[f"w{i}"] = scale * jax.random.normal(
            keys[i - 1], (din, dout), dtype=jnp.float32)
        params[f"b{i}"] = jnp.zeros((1, dout), dtype=jnp.float32)
    return params


def _reference(states, p):
    h1 = jnp.maximum(states @ p["w1"] + p["b1"], 0.0)
    h2 = jnp.maximum(h1 @ p["w2"] + p["b2"], 0.0)
    return jnp.tanh(h2 @ p["w3"] + p["b3"])


if __name__ == "__main__":
    key = jax.random.PRNGKey(0)
    k_state, k_param = jax.random.split(key)

    # Small shapes consistent with DeterministicPolicy(state_shape, action_shape).
    batch = 8
    state_dim = 16
    action_dim = 8
    hidden_units = (32, 32)

    params = init_params(k_param, state_dim, action_dim, hidden_units)
    prepared = prepare_params(params)   # one-time: outside the forward pass

    # Case 1: B a multiple of the tile -> no batch pad, single grid step.
    states = jax.random.normal(k_state, (batch, state_dim), dtype=jnp.float32)
    actions = deterministic_policy_forward(states, prepared)
    actions = jax.block_until_ready(actions)
    ref = _reference(states, params)
    assert actions.shape == (batch, action_dim)
    # bf16 matmul inputs / bf16 output (f32 accumulate) vs f32 reference.
    assert jnp.allclose(actions, ref, atol=2e-2, rtol=2e-2)

    # Case 2: awkward B + tiny tile -> exercises batch padding and a
    # multi-step pipelined grid.
    states2 = jax.random.normal(k_state, (20, state_dim), dtype=jnp.float32)
    actions2 = deterministic_policy_forward(states2, prepared, tile_b=8)
    actions2 = jax.block_until_ready(actions2)
    ref2 = _reference(states2, params)
    assert actions2.shape == (20, action_dim)
    assert jnp.allclose(actions2, ref2, atol=2e-2, rtol=2e-2)

    print("KERNEL_OK")
</pallas_src>

<mosaic_0001>
module attributes {stable_mosaic.version = 11 : i64} {
  func.func @_policy_kernel(%arg0: i32, %arg1: memref<8x16xf32, #tpu.memory_space<vmem>>, %arg2: memref<16x32xbf16, #tpu.memory_space<vmem>>, %arg3: memref<1x32xf32, #tpu.memory_space<vmem>>, %arg4: memref<32x32xbf16, #tpu.memory_space<vmem>>, %arg5: memref<1x32xf32, #tpu.memory_space<vmem>>, %arg6: memref<32x128xbf16, #tpu.memory_space<vmem>>, %arg7: memref<1x128xf32, #tpu.memory_space<vmem>>, %arg8: memref<8x128xbf16, #tpu.memory_space<vmem>>) attributes {dimension_semantics = [#tpu.dimension_semantics<parallel>], iteration_bounds = array<i64: 1>, scalar_prefetch = 0 : i64, scratch_operands = 0 : i64, tpu.core_type = #tpu.core_type<tc>, window_params = [{transform_indices = @transform_0, window_bounds = array<i64: 8, 16>}, {pipeline_mode = #tpu.pipeline_mode<synchronous>, transform_indices = @transform_1, window_bounds = array<i64: 16, 32>}, {pipeline_mode = #tpu.pipeline_mode<synchronous>, transform_indices = @transform_2, window_bounds = array<i64: 1, 32>}, {pipeline_mode = #tpu.pipeline_mode<synchronous>, transform_indices = @transform_3, window_bounds = array<i64: 32, 32>}, {pipeline_mode = #tpu.pipeline_mode<synchronous>, transform_indices = @transform_4, window_bounds = array<i64: 1, 32>}, {pipeline_mode = #tpu.pipeline_mode<synchronous>, transform_indices = @transform_5, window_bounds = array<i64: 32, 128>}, {pipeline_mode = #tpu.pipeline_mode<synchronous>, transform_indices = @transform_6, window_bounds = array<i64: 1, 128>}, {transform_indices = @transform_7, window_bounds = array<i64: 8, 128>}]} {
    %c0 = arith.constant 0 : index
    %c0_0 = arith.constant 0 : index
    %0 = vector.load %arg1[%c0, %c0_0] : memref<8x16xf32, #tpu.memory_space<vmem>>, vector<8x16xf32>
    %1 = arith.truncf %0 : vector<8x16xf32> to vector<8x16xbf16>
    %c0_1 = arith.constant 0 : index
    %c0_2 = arith.constant 0 : index
    %2 = vector.load %arg2[%c0_1, %c0_2] : memref<16x32xbf16, #tpu.memory_space<vmem>>, vector<16x32xbf16>
    %cst = arith.constant dense<0.000000e+00> : vector<8x32xf32>
    %3 = tpu.matmul %1, %2, %cst {dimension_numbers = #tpu.dot_dimension_numbers<[1], [0], [0], [1], [0, 0, 1, 1], [], []>} : vector<8x16xbf16>, vector<16x32xbf16>, vector<8x32xf32> -> vector<8x32xf32>
    %c0_3 = arith.constant 0 : index
    %c0_4 = arith.constant 0 : index
    %4 = vector.load %arg3[%c0_3, %c0_4] : memref<1x32xf32, #tpu.memory_space<vmem>>, vector<1x32xf32>
    %5 = vector.broadcast %4 : vector<1x32xf32> to vector<8x32xf32>
    %6 = arith.addf %3, %5 : vector<8x32xf32>
    %cst_5 = arith.constant 0.000000e+00 : f32
    %7 = vector.broadcast %cst_5 : f32 to vector<8x32xf32>
    %8 = arith.maximumf %6, %7 : vector<8x32xf32>
    %9 = arith.truncf %8 : vector<8x32xf32> to vector<8x32xbf16>
    %c0_6 = arith.constant 0 : index
    %c0_7 = arith.constant 0 : index
    %10 = vector.load %arg4[%c0_6, %c0_7] : memref<32x32xbf16, #tpu.memory_space<vmem>>, vector<32x32xbf16>
    %cst_8 = arith.constant dense<0.000000e+00> : vector<8x32xf32>
    %11 = tpu.matmul %9, %10, %cst_8 {dimension_numbers = #tpu.dot_dimension_numbers<[1], [0], [0], [1], [0, 0, 1, 1], [], []>} : vector<8x32xbf16>, vector<32x32xbf16>, vector<8x32xf32> -> vector<8x32xf32>
    %c0_9 = arith.constant 0 : index
    %c0_10 = arith.constant 0 : index
    %12 = vector.load %arg5[%c0_9, %c0_10] : memref<1x32xf32, #tpu.memory_space<vmem>>, vector<1x32xf32>
    %13 = vector.broadcast %12 : vector<1x32xf32> to vector<8x32xf32>
    %14 = arith.addf %11, %13 : vector<8x32xf32>
    %cst_11 = arith.constant 0.000000e+00 : f32
    %15 = vector.broadcast %cst_11 : f32 to vector<8x32xf32>
    %16 = arith.maximumf %14, %15 : vector<8x32xf32>
    %17 = arith.truncf %16 : vector<8x32xf32> to vector<8x32xbf16>
    %c0_12 = arith.constant 0 : index
    %c0_13 = arith.constant 0 : index
    %18 = vector.load %arg6[%c0_12, %c0_13] : memref<32x128xbf16, #tpu.memory_space<vmem>>, vector<32x128xbf16>
    %cst_14 = arith.constant dense<0.000000e+00> : vector<8x128xf32>
    %19 = tpu.matmul %17, %18, %cst_14 {dimension_numbers = #tpu.dot_dimension_numbers<[1], [0], [0], [1], [0, 0, 1, 1], [], []>} : vector<8x32xbf16>, vector<32x128xbf16>, vector<8x128xf32> -> vector<8x128xf32>
    %c0_15 = arith.constant 0 : index
    %c0_16 = arith.constant 0 : index
    %20 = vector.load %arg7[%c0_15, %c0_16] : memref<1x128xf32, #tpu.memory_space<vmem>>, vector<1x128xf32>
    %21 = vector.broadcast %20 : vector<1x128xf32> to vector<8x128xf32>
    %22 = arith.addf %19, %21 : vector<8x128xf32>
    %23 = math.tanh %22 : vector<8x128xf32>
    %24 = arith.truncf %23 : vector<8x128xf32> to vector<8x128xbf16>
    %c0_17 = arith.constant 0 : index
    %c0_18 = arith.constant 0 : index
    %25 = vector.load %arg8[%c0_17, %c0_18] : memref<8x128xbf16, #tpu.memory_space<vmem>>, vector<8x128xbf16>
    tpu.vector_store %arg8[%c0_17, %c0_18], %24 {strides = array<i32>} : memref<8x128xbf16, #tpu.memory_space<vmem>>, vector<8x128xbf16>,
    return
  }
  func.func @transform_0(%arg0: i32) -> (i32, i32) {
    %c0_i32 = arith.constant 0 : i32
    %c0_i32_0 = arith.constant 0 : i32
    return %arg0, %c0_i32 : i32, i32
  }
  func.func @transform_1(%arg0: i32) -> (i32, i32) {
    %c0_i32 = arith.constant 0 : i32
    %c0_i32_0 = arith.constant 0 : i32
    %c0_i32_1 = arith.constant 0 : i32
    return %c0_i32, %c0_i32_0 : i32, i32
  }
  func.func @transform_2(%arg0: i32) -> (i32, i32) {
    %c0_i32 = arith.constant 0 : i32
    %c0_i32_0 = arith.constant 0 : i32
    %c0_i32_1 = arith.constant 0 : i32
    return %c0_i32, %c0_i32_0 : i32, i32
  }
  func.func @transform_3(%arg0: i32) -> (i32, i32) {
    %c0_i32 = arith.constant 0 : i32
    %c0_i32_0 = arith.constant 0 : i32
    %c0_i32_1 = arith.constant 0 : i32
    return %c0_i32, %c0_i32_0 : i32, i32
  }
  func.func @transform_4(%arg0: i32) -> (i32, i32) {
    %c0_i32 = arith.constant 0 : i32
    %c0_i32_0 = arith.constant 0 : i32
    %c0_i32_1 = arith.constant 0 : i32
    return %c0_i32, %c0_i32_0 : i32, i32
  }
  func.func @transform_5(%arg0: i32) -> (i32, i32) {
    %c0_i32 = arith.constant 0 : i32
    %c0_i32_0 = arith.constant 0 : i32
    %c0_i32_1 = arith.constant 0 : i32
    return %c0_i32, %c0_i32_0 : i32, i32
  }
  func.func @transform_6(%arg0: i32) -> (i32, i32) {
    %c0_i32 = arith.constant 0 : i32
    %c0_i32_0 = arith.constant 0 : i32
    %c0_i32_1 = arith.constant 0 : i32
    return %c0_i32, %c0_i32_0 : i32, i32
  }
  func.func @transform_7(%arg0: i32) -> (i32, i32) {
    %c0_i32 = arith.constant 0 : i32
    %c0_i32_0 = arith.constant 0 : i32
    return %arg0, %c0_i32 : i32, i32
  }
}

</mosaic_0001>

<bundles_post_ra>
// kernel: tpu_custom_call.1
= control target key start
LH: loop header
LB: loop body
LE: loop exit
PB: predicated region body
PF: predicated region fallthrough
CT: control target
= control target key end

     0   :  { %12 = vsyncpa [#allocation3], 0  ;;  %s551_s0 = inlined_call_operand.hbm [shape: f32[8,16], index: 0, kind: input, shape index: {}]   ;;  %s552_s1 = inlined_call_operand.hbm [shape: bf16[16,32], index: 1, kind: input, shape index: {}]   ;;  %s553_s2 = inlined_call_operand.vmem [shape: f32[1,32], index: 2, kind: input, shape index: {}]   ;;  %s554_s3 = inlined_call_operand.hbm [shape: bf16[32,32], index: 3, kind: input, shape index: {}]   ;;  %s555_s4 = inlined_call_operand.vmem [shape: f32[1,32], index: 4, kind: input, shape index: {}]   ;;  %s556_s5 = inlined_call_operand.vmem [shape: bf16[32,128], index: 5, kind: input, shape index: {}]   ;;  %s557_s6 = inlined_call_operand.vmem [shape: f32[1,128], index: 6, kind: input, shape index: {}]   ;;  %s558_s7 = inlined_call_operand.hbm [shape: bf16[8,128], index: 7, kind: output, shape index: {}]  }
   0x1   :  { %13 = vsyncpa [#allocation6], 0 }
   0x2   :  { %14 = vsyncpa [#allocation4], 0  ;;  %s434_s24 = smov [#allocation5]   ;;  %s340_s28 = scalar_lea.hbm %s552_s1, 128 }
   0x3   :  { %s30_s25 = sshll.u32 %s434_s24, 4  ;;  %p341_p0 = scmp.ne.s32.totalorder %s552_s1, %s340_s28  ;;  %s31_s25 = int_to_ptr.vmem [resolvable:$true] %s30_s25 }
   0x4   :  { %p344_p1 = scmp.lt.u32.totalorder %s340_s28, %s552_s1 }
   0x6   :  { %p346_p2 = pnand %p344_p1, %p341_p0 }
   0x8   :  { %349 = shalt.err (!%p346_p2)
}
   0x9   :  { %s350_s10 = scalar_lea.vmem %s31_s25, 128  ;;  %p355_p4 = scmp.lt.s32.totalorder %s31_s25, %s31_s25 }
   0xa   :  { %p351_p3 = scmp.ne.s32.totalorder %s31_s25, %s350_s10  ;;  %p356_p5 = scmp.lt.s32.totalorder %s350_s10, %s350_s10 }
   0xc   :  { %p357_p6 = por %p356_p5, %p355_p4 }
   0xe   :  { %p358_p7 = pnand %p357_p6, %p351_p3 }
  0x10   :  { %361 = shalt.err (!%p358_p7)
}
  0x11   :  { %s435_s11 = smov 64   ;;  %s436_s12 = smov 4  }
  0x12   :  { %36 = dma.hbm_to_vmem [thread:$0]  %s552_s1, 128, %s31_s25, [#allocation6], %s435_s11, %s435_s11, %s436_s12  }
  0x13   :  { %s437_s15 = smov [#allocation2]   ;;  %s438_s17 = smov [#allocation7]  }
  0x14   :  { %s21_s16 = sshll.u32 %s437_s15, 4  ;;  %s44_s18 = sshll.u32 %s438_s17, 4  ;;  %s22_s16 = int_to_ptr.vmem [resolvable:$true] %s21_s16  ;;  %s45_s18 = int_to_ptr.vmem [resolvable:$true] %s44_s18 }
  0x15   :  { %s362_s21 = scalar_lea.hbm %s551_s0, 128 }
  0x16   :  { %p363_p8 = scmp.ne.s32.totalorder %s551_s0, %s362_s21  ;;  %p366_p9 = scmp.lt.u32.totalorder %s362_s21, %s551_s0 }
  0x18   :  { %p368_p10 = pnand %p366_p9, %p363_p8 }
  0x1a   :  { %371 = shalt.err (!%p368_p10)
}
  0x1b   :  { %s372_s1 = scalar_lea.vmem %s22_s16, 128  ;;  %p377_p12 = scmp.lt.s32.totalorder %s22_s16, %s22_s16 }
  0x1c   :  { %p373_p11 = scmp.ne.s32.totalorder %s22_s16, %s372_s1  ;;  %p378_p13 = scmp.lt.s32.totalorder %s372_s1, %s372_s1 }
  0x1e   :  { %p379_p0 = por %p378_p13, %p377_p12 }
  0x20   :  { %p380_p1 = pnand %p379_p0, %p373_p11 }
  0x22   :  { %383 = shalt.err (!%p380_p1)
}
  0x23   :  { %24 = dma.hbm_to_vmem [thread:$0]  %s551_s0, 128, %s22_s16, [#allocation3]  }
  0x24   :  { %s384_s30 = scalar_lea.hbm %s554_s3, 256 }
  0x25   :  { %p385_p2 = scmp.ne.s32.totalorder %s554_s3, %s384_s30  ;;  %p388_p3 = scmp.lt.u32.totalorder %s384_s30, %s554_s3 }
  0x27   :  { %p390_p4 = pnand %p388_p3, %p385_p2 }
  0x29   :  { %393 = shalt.err (!%p390_p4)
}
  0x2a   :  { %s394_s14 = scalar_lea.vmem %s45_s18, 256  ;;  %p399_p6 = scmp.lt.s32.totalorder %s45_s18, %s45_s18 }
  0x2b   :  { %p395_p5 = scmp.ne.s32.totalorder %s45_s18, %s394_s14  ;;  %p400_p7 = scmp.lt.s32.totalorder %s394_s14, %s394_s14 }
  0x2d   :  { %p401_p8 = por %p400_p7, %p399_p6 }
  0x2f   :  { %p402_p9 = pnand %p401_p8, %p395_p5 }
  0x31   :  { %405 = shalt.err (!%p402_p9)
}
  0x32   :  { %50 = dma.hbm_to_vmem [thread:$0]  %s554_s3, 256, %s45_s18, [#allocation6], %s435_s11, %s435_s11, %s436_s12  }
  0x33   :  { %428 = dma.done.wait [#allocation3], 128  }
  0x34   :  { %429 = vsyncadd [#allocation3], 4294967168 }
  0x35   :  { %430 = dma.done.wait [#allocation6], 384  }
  0x36   :  { %431 = vsyncadd [#allocation6], 4294966912  ;;  %v439_v0 = vmov 0.0   ;;  %vm440_vm0 = vmmov 0   ;;  %v333_v1 = vld [vmem:[#allocation5] sm:$0xff]   ;;  %v67_v2 = vld [vmem:[#allocation2] sm:$0xff] }
  0x37   :  { %303 = vmatprep.subr.bf16.mxu0 %v439_v0  ;;  %305 = vmatprep.mubr.msk.bf16.mxu0 %vm440_vm0, %v439_v0  ;;  %vm84_vm1 = vcmask 130048   ;;  %v68_v3 = vpack.c.bf16 %v67_v2, %v67_v2  ;;  %v334_v4 = vld [vmem:[#allocation7] sm:$0xff]   ;;  %v335_v5 = vld [vmem:[#allocation7 + $0x8] sm:$0xff]   ;;  %vm153_vm2 = vcmask 261120  }
  0x38   :  { %309 = vmatprep.subr.bf16.mxu1 %v439_v0  ;;  %313 = vmatprep.mubr.msk.bf16.mxu1 %vm440_vm0, %v439_v0  ;;  %v336_v6 = vld [vmem:[%s556_s5] sm:$0xff]   ;;  %v337_v15 = vld [vmem:[%s556_s5 + $0x8] sm:$0xff]   ;;  %s441_s5 = smov [#allocation8]  }
  0x39   :  { %304 = vmatpush3.bf16.msra.mxu0 %v333_v1  ;;  %310 = vmatpush3.bf16.msra.mxu1 %v334_v4  ;;  %v284_v7 = vld [vmem:[%s553_s2] ss:$0 sm:$0xff] }
  0x3a   :  { %317 = vmatprep.subr.bf16.mxu0 %v439_v0  ;;  %311 = vmatprep.subr.bf16.mxu1 %v439_v0  ;;  %v287_v16 = vld [vmem:[%s555_s4] ss:$0 sm:$0xff]  ;;  %s274_s4 = sshll.u32 %s441_s5, 4  ;;  %s275_s4 = int_to_ptr.vmem [resolvable:$true] %s274_s4 }
  0x3b   :  { %v291_v24 = vld [vmem:[%s557_s6] ss:$0 sm:$0xff]  ;;  %s406_s22 = scalar_lea.vmem %s275_s4, 64  ;;  %p411_p11 = scmp.lt.s32.totalorder %s275_s4, %s275_s4 }
  0x3c   :  { %306 = vmatmul.mubr.msk.bf16.vlgmr.msra.gmra.mrb[0].mxu0 %vm84_vm1, %v68_v3  ;;  %p407_p10 = scmp.ne.s32.totalorder %s275_s4, %s406_s22  ;;  %p412_p12 = scmp.lt.s32.totalorder %s406_s22, %s406_s22 }
  0x3d   :  { %321 = vmatprep.mubr.msk.bf16.mxu0 %vm440_vm0, %v439_v0  ;;  %312 = vmatpush3.bf16.msra.mxu1 %v335_v5 }
  0x3e   :  { %318 = vmatpush3.bf16.msra.mxu0 %v336_v6  ;;  %p413_p13 = por %p412_p12, %p411_p11 }
  0x3f   :  { %319 = vmatprep.subr.bf16.mxu0 %v439_v0 }
  0x40   :  { %p414_p0 = pnand %p413_p13, %p407_p10 }
  0x42   :  { %320 = vmatpush3.bf16.msra.mxu0 %v337_v15 }
 0x10f   :  { %v122_v8 = vpop.f32.mrb[0].mxu0 }
 0x110   :  { %v123_v9 = vadd.f32 %v284_v7, %v122_v8  ;;  %v307_v10 = vpop.f32.mrb[1].mxu0 }
 0x111   :  { %v125_v11 = vpop.f32.mrb[2].mxu0 }
 0x112   :  { %v128_v12 = vmax.f32 %v123_v9, 0.0  ;;  %v308_v13 = vpop.f32.mrb[3].mxu0 }
 0x114   :  { %v129_v14 = vpack.c.bf16 %v128_v12, %v128_v12 }
 0x116   :  { %314 = vmatmul.mubr.msk.bf16.vlgmr.msra.gmra.mrb[0].mxu1 %vm153_vm2, %v129_v14 }
 0x1e9   :  { %v191_v17 = vpop.f32.mrb[0].mxu1 }
 0x1ea   :  { %v192_v18 = vadd.f32 %v287_v16, %v191_v17  ;;  %v315_v19 = vpop.f32.mrb[1].mxu1 }
 0x1eb   :  { %v194_v20 = vpop.f32.mrb[2].mxu1 }
 0x1ec   :  { %v197_v21 = vmax.f32 %v192_v18, 0.0  ;;  %v316_v22 = vpop.f32.mrb[3].mxu1 }
 0x1ee   :  { %v198_v23 = vpack.c.bf16 %v197_v21, %v197_v21 }
 0x1f0   :  { %322 = vmatmul.mubr.msk.bf16.vlgmr.msra.gmra.mrb[4].mxu0 %vm153_vm2, %v198_v23 }
 0x2c3   :  { %v259_v25 = vpop.f32.mrb[4].mxu0 }
 0x2c4   :  { %v260_v26 = vadd.f32 %v291_v24, %v259_v25  ;;  %v323_v27 = vpop.f32.mrb[5].mxu0 }
 0x2c5   :  { %v262_v28 = vpop.f32.mrb[6].mxu0 }
 0x2c6   :  { %338 = vtanh.f32 %v260_v26  ;;  %v324_v29 = vpop.f32.mrb[7].mxu0 }
 0x2d0   :  { %v339_v30 = vpop.eup %338 }
 0x2d1   :  { %v266_v31 = vpack.c.bf16 %v339_v30, %v339_v30 }
 0x2d3   :  { %267 = vst [vmem:[#allocation8] sm:$0xf] %v266_v31 }
 0x2d4   :  { %417 = shalt.err (!%p414_p0)
}
 0x2d5   :  { %s418_s24 = scalar_lea.hbm %s558_s7, 64 }
 0x2d6   :  { %p419_p1 = scmp.ne.s32.totalorder %s558_s7, %s418_s24  ;;  %p422_p2 = scmp.lt.u32.totalorder %s418_s24, %s558_s7 }
 0x2d8   :  { %p424_p3 = pnand %p422_p2, %p419_p1 }
 0x2da   :  { %427 = shalt.err (!%p424_p3)
}
 0x2db   :  { %277 = dma.vmem_to_hbm [thread:$0]  %s275_s4, 64, %s558_s7, [#allocation4]  }
 0x2dc   :  { %432 = dma.done.wait [#allocation4], 64  }
 0x2dd   :  { %433 = vsyncadd [#allocation4], 4294967232 }
 0x2de   :  { %281 = vsyncpa [#allocation3], 1 }
 0x2df   :  { %282 = vsyncpa [#allocation6], 1 }
 0x2e0   :  { %283 = vsyncpa [#allocation4], 1 }

</bundles_post_ra>
